<compile_context>
chip_gen: v7x
topology: tpu7x:2x2x1
jax: 0.10.0
libtpu: 0.0.40
codegen_flags: <defaults>
</compile_context>

<pallas_src>
import functools

import jax
import jax.numpy as jnp
from jax.experimental import pallas as pl
from jax.experimental.pallas import tpu as pltpu


def _fused_base_learner_kernel(x_ref, *refs, num_layers):
    """Fused Conv1x1+BN(+ReLU) chain on one (Cin, TL) lane-dense tile.

    refs layout: (w_0, b_0, w_1, b_1, ..., w_{n-1}, b_{n-1}, o_ref)
      w_i : (Cout_i, Cin_i)   BN scale folded in, io dtype (bf16 or f32)
      b_i : (Cout_i, 1)       conv bias + BN shift folded, kept in f32
    """
    o_ref = refs[2 * num_layers]
    h = x_ref[0]  # (Cin, TL), lane-dense along TL
    for i in range(num_layers):
        w = refs[2 * i][...]        # (Cout_i, Cin_i), resident in VMEM
        b = refs[2 * i + 1][...]    # (Cout_i, 1), f32
        # MXU matmul (bf16 operands when io_dtype=bf16) with f32 accumulation;
        # bias-add + ReLU epilogue stays in f32.
        h = jnp.dot(w, h.astype(w.dtype), preferred_element_type=jnp.float32) + b
        if i != num_layers - 1:
            h = jnp.maximum(h, 0.0)
    o_ref[0] = h.astype(o_ref.dtype)


def _round_up(x, m):
    return -(-x // m) * m


def _vmem_bytes_estimate(cin, layer_dims, tl, io_bytes):
    """Rough per-step VMEM footprint for a lane tile of width `tl`."""
    cout_last = layer_dims[-1][0]
    est = 2 * cin * tl * io_bytes            # double-buffered input tile
    est += 2 * cout_last * tl * io_bytes     # double-buffered output tile
    # Largest live (input, output) intermediate pair, counted as f32.
    est += max(ci + co for co, ci in layer_dims) * tl * 4
    # Resident params (weights io dtype, biases f32), double-buffered.
    est += sum(2 * (co * ci * io_bytes + co * 4) for co, ci in layer_dims)
    return est


def _choose_lane_tile(L, cin, layer_dims, io_bytes, target, vmem_budget):
    """Lane tile: multiple of 128, <= target, <= round_up(L,128), fits budget."""
    lp128 = _round_up(max(L, 1), 128)
    tl = min(max(target - target % 128, 128), lp128)
    while tl > 128 and _vmem_bytes_estimate(cin, layer_dims, tl, io_bytes) > vmem_budget:
        tl -= 128
    return tl


def base_learner_forward(
    x_ncl,
    layers,
    *,
    io_dtype=jnp.bfloat16,
    lane_tile_target=16384,
    vmem_budget_bytes=40 * 1024 * 1024,
):
    """Forward pass matching BaseLearner.forward on an (N, C, L) input."""
    N, Cin, L = x_ncl.shape
    num_layers = len(layers)
    layer_dims = [tuple(w.shape) for w, _ in layers]  # [(Cout_i, Cin_i), ...]
    Cout_last = layer_dims[-1][0]
    io_bytes = jnp.dtype(io_dtype).itemsize

    TL = _choose_lane_tile(L, Cin, layer_dims, io_bytes, lane_tile_target,
                           vmem_budget_bytes)
    Lp = _round_up(L, TL)  # pad L so every store is a full lane-dense tile

    x = x_ncl.astype(io_dtype)
    if Lp != L:
        x = jnp.pad(x, ((0, 0), (0, 0), (0, Lp - L)))

    # Grid ordered (lane-tiles, batch) so the high-trip-count axis is the
    # leading parallel axis (v7x megacore sharding).
    in_specs = [pl.BlockSpec((1, Cin, TL), lambda l, n: (n, 0, l))]
    args = [x]
    for w, b in layers:
        co, ci = w.shape
        # Constant index_map -> parameter blocks stay resident in VMEM.
        in_specs.append(pl.BlockSpec((co, ci), lambda l, n: (0, 0)))
        in_specs.append(pl.BlockSpec((co, 1), lambda l, n: (0, 0)))
        args.append(w.astype(io_dtype))
        args.append(b.astype(jnp.float32))

    est = _vmem_bytes_estimate(Cin, layer_dims, TL, io_bytes)
    vmem_limit = int(min(56 * 1024 * 1024, max(2 * est, 16 * 1024 * 1024)))

    kernel = functools.partial(_fused_base_learner_kernel, num_layers=num_layers)
    out = pl.pallas_call(
        kernel,
        out_shape=jax.ShapeDtypeStruct((N, Cout_last, Lp), io_dtype),
        grid=(Lp // TL, N),
        in_specs=in_specs,
        # If xprof ever shows exposed input DMA, add
        # pipeline_mode=pl.Buffered(3) to in_specs[0] only.
        out_specs=pl.BlockSpec((1, Cout_last, TL), lambda l, n: (n, 0, l)),
        compiler_params=pltpu.CompilerParams(
            dimension_semantics=("parallel", "parallel"),
            vmem_limit_bytes=vmem_limit,
        ),
    )(*args)

    if Lp != L:
        out = out[:, :, :L]
    return out


def init_base_learner(key, in_channels, params):
    """Deterministic params mirroring BaseLearner.__init__ shapes.

    PyTorch layer i:
      Conv1d weight (params[i], in_dim, 1), Conv1d bias (params[i],)
      BatchNorm1d gamma/beta/running_mean/running_var (params[i],)
    Eval-mode BN is folded:  W' = (gamma/sqrt(var+eps))[:,None] * W
                             b' = (gamma/sqrt(var+eps)) * (b_conv - mean) + beta
    """
    dims = [in_channels] + list(params)
    eps = 1e-5
    layers = []
    for i in range(len(params)):
        cin, cout = dims[i], dims[i + 1]
        key, k_w, k_b, k_g, k_be, k_m, k_v = jax.random.split(key, 7)
        w = 0.1 * jax.random.normal(k_w, (cout, cin), jnp.float32)
        b_conv = 0.1 * jax.random.normal(k_b, (cout,), jnp.float32)
        gamma = 1.0 + 0.1 * jax.random.normal(k_g, (cout,), jnp.float32)
        beta = 0.1 * jax.random.normal(k_be, (cout,), jnp.float32)
        run_mean = 0.1 * jax.random.normal(k_m, (cout,), jnp.float32)
        run_var = jnp.abs(1.0 + 0.1 * jax.random.normal(k_v, (cout,), jnp.float32))
        scale = gamma / jnp.sqrt(run_var + eps)
        w_folded = scale[:, None] * w                              # (cout, cin)
        b_folded = (scale * (b_conv - run_mean) + beta)[:, None]   # (cout, 1)
        layers.append((w_folded, b_folded))
    return layers


def _reference_forward(x_ncl, layers):
    """Pure-JAX f32 reference for correctness checking."""
    h = x_ncl
    for i, (w, b) in enumerate(layers):
        h = jnp.einsum("oc,ncl->nol", w, h) + b[None, :, :]
        if i != len(layers) - 1:
            h = jnp.maximum(h, 0.0)
    return h


if __name__ == "__main__":
    key = jax.random.PRNGKey(0)
    key_x, key_p = jax.random.split(key)

    # Small shapes consistent with the module: Conv1d expects (N, C_in, L).
    N, in_channels, L = 2, 4, 16
    params = [32, 64, 32]  # BaseLearner(in_channels=4, params=[32, 64, 32])

    x = jax.random.normal(key_x, (N, in_channels, L), jnp.float32)
    layers = init_base_learner(key_p, in_channels, params)
    ref = _reference_forward(x, layers)

    # f32 I/O path: tight numerical check against the pure-JAX reference.
    out_f32 = jax.block_until_ready(
        base_learner_forward(x, layers, io_dtype=jnp.float32)
    )
    assert out_f32.shape == (N, params[-1], L), out_f32.shape
    assert jnp.isfinite(out_f32).all()
    assert jnp.allclose(out_f32, ref, rtol=1e-4, atol=1e-4), float(
        jnp.max(jnp.abs(out_f32 - ref))
    )

    # bf16 I/O path (default, bandwidth-optimized): looser tolerance.
    out_bf16 = jax.block_until_ready(base_learner_forward(x, layers))
    assert out_bf16.shape == (N, params[-1], L), out_bf16.shape
    out_bf16_f32 = out_bf16.astype(jnp.float32)
    assert jnp.isfinite(out_bf16_f32).all()
    assert jnp.allclose(out_bf16_f32, ref, rtol=5e-2, atol=5e-2), float(
        jnp.max(jnp.abs(out_bf16_f32 - ref))
    )

    print("KERNEL_OK")
</pallas_src>

<mosaic_0001>
module attributes {stable_mosaic.version = 11 : i64} {
  func.func @_fused_base_learner_kernel(%arg0: i32, %arg1: i32, %arg2: memref<1x4x128xf32, #tpu.memory_space<vmem>>, %arg3: memref<32x4xf32, #tpu.memory_space<vmem>>, %arg4: memref<32x1xf32, #tpu.memory_space<vmem>>, %arg5: memref<64x32xf32, #tpu.memory_space<vmem>>, %arg6: memref<64x1xf32, #tpu.memory_space<vmem>>, %arg7: memref<32x64xf32, #tpu.memory_space<vmem>>, %arg8: memref<32x1xf32, #tpu.memory_space<vmem>>, %arg9: memref<1x32x128xf32, #tpu.memory_space<vmem>>) attributes {dimension_semantics = [#tpu.dimension_semantics<parallel>, #tpu.dimension_semantics<parallel>], iteration_bounds = array<i64: 1, 2>, scalar_prefetch = 0 : i64, scratch_operands = 0 : i64, tpu.core_type = #tpu.core_type<tc>, window_params = [{transform_indices = @transform_0, window_bounds = array<i64: 1, 4, 128>}, {pipeline_mode = #tpu.pipeline_mode<synchronous>, transform_indices = @transform_1, window_bounds = array<i64: 32, 4>}, {pipeline_mode = #tpu.pipeline_mode<synchronous>, transform_indices = @transform_2, window_bounds = array<i64: 32, 1>}, {pipeline_mode = #tpu.pipeline_mode<synchronous>, transform_indices = @transform_3, window_bounds = array<i64: 64, 32>}, {pipeline_mode = #tpu.pipeline_mode<synchronous>, transform_indices = @transform_4, window_bounds = array<i64: 64, 1>}, {pipeline_mode = #tpu.pipeline_mode<synchronous>, transform_indices = @transform_5, window_bounds = array<i64: 32, 64>}, {pipeline_mode = #tpu.pipeline_mode<synchronous>, transform_indices = @transform_6, window_bounds = array<i64: 32, 1>}, {transform_indices = @transform_7, window_bounds = array<i64: 1, 32, 128>}]} {
    %c0 = arith.constant 0 : index
    %c0_0 = arith.constant 0 : index
    %c0_1 = arith.constant 0 : index
    %0 = vector.load %arg2[%c0, %c0_0, %c0_1] : memref<1x4x128xf32, #tpu.memory_space<vmem>>, vector<1x4x128xf32>
    %1 = vector.shape_cast %0 : vector<1x4x128xf32> to vector<4x128xf32>
    %c0_2 = arith.constant 0 : index
    %c0_3 = arith.constant 0 : index
    %2 = vector.load %arg3[%c0_2, %c0_3] : memref<32x4xf32, #tpu.memory_space<vmem>>, vector<32x4xf32>
    %c0_4 = arith.constant 0 : index
    %c0_5 = arith.constant 0 : index
    %3 = vector.load %arg4[%c0_4, %c0_5] : memref<32x1xf32, #tpu.memory_space<vmem>>, vector<32x1xf32>
    %cst = arith.constant dense<0.000000e+00> : vector<32x128xf32>
    %4 = tpu.matmul %2, %1, %cst {dimension_numbers = #tpu.dot_dimension_numbers<[1], [0], [0], [1], [0, 0, 1, 1], [], []>} : vector<32x4xf32>, vector<4x128xf32>, vector<32x128xf32> -> vector<32x128xf32>
    %5 = vector.broadcast %3 : vector<32x1xf32> to vector<32x128xf32>
    %6 = arith.addf %4, %5 : vector<32x128xf32>
    %cst_6 = arith.constant 0.000000e+00 : f32
    %7 = vector.broadcast %cst_6 : f32 to vector<32x128xf32>
    %8 = arith.maximumf %6, %7 : vector<32x128xf32>
    %c0_7 = arith.constant 0 : index
    %c0_8 = arith.constant 0 : index
    %9 = vector.load %arg5[%c0_7, %c0_8] : memref<64x32xf32, #tpu.memory_space<vmem>>, vector<64x32xf32>
    %c0_9 = arith.constant 0 : index
    %c0_10 = arith.constant 0 : index
    %10 = vector.load %arg6[%c0_9, %c0_10] : memref<64x1xf32, #tpu.memory_space<vmem>>, vector<64x1xf32>
    %cst_11 = arith.constant dense<0.000000e+00> : vector<64x128xf32>
    %11 = tpu.matmul %9, %8, %cst_11 {dimension_numbers = #tpu.dot_dimension_numbers<[1], [0], [0], [1], [0, 0, 1, 1], [], []>} : vector<64x32xf32>, vector<32x128xf32>, vector<64x128xf32> -> vector<64x128xf32>
    %12 = vector.broadcast %10 : vector<64x1xf32> to vector<64x128xf32>
    %13 = arith.addf %11, %12 : vector<64x128xf32>
    %cst_12 = arith.constant 0.000000e+00 : f32
    %14 = vector.broadcast %cst_12 : f32 to vector<64x128xf32>
    %15 = arith.maximumf %13, %14 : vector<64x128xf32>
    %c0_13 = arith.constant 0 : index
    %c0_14 = arith.constant 0 : index
    %16 = vector.load %arg7[%c0_13, %c0_14] : memref<32x64xf32, #tpu.memory_space<vmem>>, vector<32x64xf32>
    %c0_15 = arith.constant 0 : index
    %c0_16 = arith.constant 0 : index
    %17 = vector.load %arg8[%c0_15, %c0_16] : memref<32x1xf32, #tpu.memory_space<vmem>>, vector<32x1xf32>
    %cst_17 = arith.constant dense<0.000000e+00> : vector<32x128xf32>
    %18 = tpu.matmul %16, %15, %cst_17 {dimension_numbers = #tpu.dot_dimension_numbers<[1], [0], [0], [1], [0, 0, 1, 1], [], []>} : vector<32x64xf32>, vector<64x128xf32>, vector<32x128xf32> -> vector<32x128xf32>
    %19 = vector.broadcast %17 : vector<32x1xf32> to vector<32x128xf32>
    %20 = arith.addf %18, %19 : vector<32x128xf32>
    %c0_18 = arith.constant 0 : index
    %c0_19 = arith.constant 0 : index
    %c0_20 = arith.constant 0 : index
    %21 = vector.load %arg9[%c0_18, %c0_19, %c0_20] : memref<1x32x128xf32, #tpu.memory_space<vmem>>, vector<1x32x128xf32>
    %22 = vector.shape_cast %21 : vector<1x32x128xf32> to vector<32x128xf32>
    %23 = vector.shape_cast %20 : vector<32x128xf32> to vector<1x32x128xf32>
    tpu.vector_store %arg9[%c0_18, %c0_19, %c0_20], %23 {strides = array<i32>} : memref<1x32x128xf32, #tpu.memory_space<vmem>>, vector<1x32x128xf32>,
    return
  }
  func.func @transform_0(%arg0: i32, %arg1: i32) -> (i32, i32, i32) {
    %c0_i32 = arith.constant 0 : i32
    %c0_i32_0 = arith.constant 0 : i32
    return %arg1, %c0_i32, %arg0 : i32, i32, i32
  }
  func.func @transform_1(%arg0: i32, %arg1: i32) -> (i32, i32) {
    %c0_i32 = arith.constant 0 : i32
    %c0_i32_0 = arith.constant 0 : i32
    %c0_i32_1 = arith.constant 0 : i32
    return %c0_i32, %c0_i32_0 : i32, i32
  }
  func.func @transform_2(%arg0: i32, %arg1: i32) -> (i32, i32) {
    %c0_i32 = arith.constant 0 : i32
    %c0_i32_0 = arith.constant 0 : i32
    %c0_i32_1 = arith.constant 0 : i32
    return %c0_i32, %c0_i32_0 : i32, i32
  }
  func.func @transform_3(%arg0: i32, %arg1: i32) -> (i32, i32) {
    %c0_i32 = arith.constant 0 : i32
    %c0_i32_0 = arith.constant 0 : i32
    %c0_i32_1 = arith.constant 0 : i32
    return %c0_i32, %c0_i32_0 : i32, i32
  }
  func.func @transform_4(%arg0: i32, %arg1: i32) -> (i32, i32) {
    %c0_i32 = arith.constant 0 : i32
    %c0_i32_0 = arith.constant 0 : i32
    %c0_i32_1 = arith.constant 0 : i32
    return %c0_i32, %c0_i32_0 : i32, i32
  }
  func.func @transform_5(%arg0: i32, %arg1: i32) -> (i32, i32) {
    %c0_i32 = arith.constant 0 : i32
    %c0_i32_0 = arith.constant 0 : i32
    %c0_i32_1 = arith.constant 0 : i32
    return %c0_i32, %c0_i32_0 : i32, i32
  }
  func.func @transform_6(%arg0: i32, %arg1: i32) -> (i32, i32) {
    %c0_i32 = arith.constant 0 : i32
    %c0_i32_0 = arith.constant 0 : i32
    %c0_i32_1 = arith.constant 0 : i32
    return %c0_i32, %c0_i32_0 : i32, i32
  }
  func.func @transform_7(%arg0: i32, %arg1: i32) -> (i32, i32, i32) {
    %c0_i32 = arith.constant 0 : i32
    %c0_i32_0 = arith.constant 0 : i32
    return %arg1, %c0_i32, %arg0 : i32, i32, i32
  }
}

</mosaic_0001>

<bundles_post_ra>
// kernel: tpu_custom_call.1
= control target key start
LH: loop header
LB: loop body
LE: loop exit
PB: predicated region body
PF: predicated region fallthrough
CT: control target
= control target key end

     0   :  { %12 = vsyncpa [#allocation3], 0  ;;  %s1392_s0 = inlined_call_operand.vmem [shape: f32[2,4,128], index: 0, kind: input, shape index: {}]   ;;  %s1393_s1 = inlined_call_operand.vmem [shape: f32[32,4], index: 1, kind: input, shape index: {}]   ;;  %s1394_s2 = inlined_call_operand.vmem [shape: f32[32,1], index: 2, kind: input, shape index: {}]   ;;  %s1395_s3 = inlined_call_operand.vmem [shape: f32[64,32], index: 3, kind: input, shape index: {}]   ;;  %s1396_s4 = inlined_call_operand.vmem [shape: f32[64,1], index: 4, kind: input, shape index: {}]   ;;  %s1397_s5 = inlined_call_operand.vmem [shape: f32[32,64], index: 5, kind: input, shape index: {}]   ;;  %s1398_s6 = inlined_call_operand.vmem [shape: f32[32,1], index: 6, kind: input, shape index: {}]   ;;  %s1399_s7 = inlined_call_operand.hbm [shape: f32[2,32,128], index: 7, kind: output, shape index: {}]  }
   0x1   :  { %14 = vsyncpa [#allocation3 + $0x1], 0  ;;  %s1165_s24 = smov 0   ;;  %s1167_s25 = smov 0  }
   0x2   :  { %s1169_s26 = smov 0   ;;  %s1171_s27 = smov 0  }
   0x3   :  { %s1173_s28 = smov 0   ;;  %s1175_s29 = smov 0  }
   0x4 LB: > { %s848_s30 = sadd.s32 4294967295, %s1119_s29   ;;  %s849_s8 = sadd.s32 4294967294, %s1119_s29   ;;  %s1119_s29 = sphi %s1175_s29, %s20_s29   ;;  %s1115_s28 = sphi %s1173_s28, %s1406_s28   ;;  %s1111_s27 = sphi %s1171_s27, %s1405_s27   ;;  %s1107_s26 = sphi %s1169_s26, %s1404_s26   ;;  %s1103_s25 = sphi %s1167_s25, %s1403_s25   ;;  %s1099_s24 = sphi %s1165_s24, %s1402_s24  }
   0x5   : > { %s29_s9 = sadd.s32 1, %s1115_s28  ;;  %s195_s10 = sadd.s32 1, %s1107_s26 }
   0x6   : > { %p30_p0 = scmp.ge.s32.totalorder %s29_s9, 2  ;;  %p205_p1 = scmp.ne.s32.totalorder %s1107_s26, %s1103_s25 }
   0x7   : > { %p206_p2 = scmp.eq.s32.totalorder %s848_s30, 1  ;;  %p211_p3 = scmp.ne.s32.totalorder %s1103_s25, %s1099_s24 }
   0x8   : > { %s1408_s9 = smov (%p30_p0, %s29_s9), 0  ;;  %p212_p5 = scmp.eq.s32.totalorder %s849_s8, 1 }
   0x9   : > { %p1205_p4 = por %p206_p2, %p205_p1  ;;  %s190_s12 = ssub.s32 %s1115_s28, %s1408_s9 }
   0xa   : > { %p852_p6 = scmp.ge.s32.totalorder %s1119_s29, 1  ;;  %p193_p7 = scmp.eq.s32.totalorder %s190_s12, 0 }
   0xb   : > { %p1212_p8 = por %p212_p5, %p211_p3  ;;  %p258_p9 = scmp.lt.s32.totalorder %s1119_s29, 3 }
   0xc   : > { %s1218_s14 = scalar_select %p193_p7, %s1107_s26, %s195_s10  }
   0xd   : > { %p259_p10 = pnand %p852_p6, %p258_p9 }
   0xe   : > { %p292_p11 = scmp.lt.s32.totalorder (!%p259_p10), %s1111_s27, 1  ;;  %v300_v0 = vld [vmem:[%s1393_s1] sm:$0xff] (!%p259_p10)  ;;  %vm328_vm0 = vcmask (!%p259_p10), 31744   ;;  %v306_v2 = vld [vmem:[%s1394_s2 + $0x10] sm:$0xff] (!%p259_p10)  ;;  %v1121_v3 = vmov (!%p259_p10), 0   ;;  %vm341_vm1 = vcmask (!%p259_p10), 1043456  }
   0xf   : > { %262 = sbr.rel (%p259_p10) target bundleno = 725 (0x2d5), region = 48  ;;  %909 = vmatprep.mubr.msk.f32.mxu0 (!%p259_p10), %vm328_vm0, %v300_v0  ;;  %v304_v1 = vld [vmem:[%s1394_s2] sm:$0xff] (!%p259_p10)  ;;  %1039 = vset.pattern.permute.xlu0 (!%p259_p10), %v1121_v3  ;;  %v305_v4 = vld [vmem:[%s1394_s2 + $0x8] sm:$0xff] (!%p259_p10)  ;;  %v307_v5 = vld [vmem:[%s1394_s2 + $0x18] sm:$0xff] (!%p259_p10)  ;;  %vm490_vm2 = vcmask (!%p259_p10), 261120   ;;  %vm656_vm3 = vcmask (!%p259_p10), 523264  }
  0x10   : > { %1040 = vset.pattern.permute.xlu1 (!%p259_p10), %v1121_v3  ;;  %310 = vperm.xlu0 (!%p259_p10), %1039, %v304_v1   ;;  %v301_v7 = vld [vmem:[%s1393_s1 + $0x8] sm:$0xff] (!%p259_p10)  ;;  %v302_v8 = vld [vmem:[%s1393_s1 + $0x10] sm:$0xff] (!%p259_p10)  ;;  %v442_v9 = vld [vmem:[%s1396_s4] sm:$0xff] (!%p259_p10)  ;;  %s289_s19 = sand.u32 (!%p259_p10), 1, %s1103_s25   ;;  %s1122_s15 = smov (!%p259_p10), [#allocation2]  }
  0x11   : > { %320 = vperm.xlu1 (!%p259_p10), %1040, %v306_v2   ;;  %v443_v10 = vld [vmem:[%s1396_s4 + $0x8] sm:$0xff] (!%p259_p10)  ;;  %v303_v11 = vld [vmem:[%s1393_s1 + $0x18] sm:$0xff] (!%p259_p10)  ;;  %v444_v12 = vld [vmem:[%s1396_s4 + $0x10] sm:$0xff] (!%p259_p10)  ;;  %s853_s20 = sshll.u32 (!%p259_p10), %s289_s19, 5  ;;  %s1045_s16 = sshll.u32 (!%p259_p10), %s1122_s15, 4  ;;  %s1046_s16 = int_to_ptr.vmem [resolvable:$false] %s1045_s16 }
  0x12   : > { %v445_v13 = vld [vmem:[%s1396_s4 + $0x18] sm:$0xff] (!%p259_p10)  ;;  %v446_v14 = vld [vmem:[%s1396_s4 + $0x20] sm:$0xff] (!%p259_p10)  ;;  %v447_v15 = vld [vmem:[%s1396_s4 + $0x28] sm:$0xff] (!%p259_p10)  ;;  %s1047_s17 = scalar_lea.vmem (!%p259_p10), %s1046_s16, 1024 }
  0x13   : > { %v448_v16 = vld [vmem:[%s1396_s4 + $0x30] sm:$0xff] (!%p259_p10)  ;;  %v449_v17 = vld [vmem:[%s1396_s4 + $0x38] sm:$0xff] (!%p259_p10)  ;;  %v632_v18 = vld [vmem:[%s1398_s6] sm:$0xff] (!%p259_p10) }
  0x14   : > { %315 = vperm.xlu0 (!%p259_p10), %1039, %v305_v4   ;;  %v633_v19 = vld [vmem:[%s1398_s6 + $0x8] sm:$0xff] (!%p259_p10)  ;;  %v634_v20 = vld [vmem:[%s1398_s6 + $0x10] sm:$0xff] (!%p259_p10)  ;;  %v635_v21 = vld [vmem:[%s1398_s6 + $0x18] sm:$0xff] (!%p259_p10) }
  0x15   : > { %325 = vperm.xlu1 (!%p259_p10), %1040, %v307_v5   ;;  %v434_v22 = vld [vmem:[%s1395_s3] sm:$0xff] (!%p259_p10)  ;;  %v435_v41 = vld [vmem:[%s1395_s3 + $0x8] sm:$0xff] (!%p259_p10)  ;;  %v436_v42 = vld [vmem:[%s1395_s3 + $0x10] sm:$0xff] (!%p259_p10) }
  0x16   : > { %s293_s21 = scalar_select %p292_p11, %s1111_s27, 1  ;;  %923 = vmatprep.mubr.msk.f32.mxu1 %vm490_vm2, %v434_v22  ;;  %v437_v43 = vld [vmem:[%s1395_s3 + $0x18] sm:$0xff]  ;;  %v438_v44 = vld [vmem:[%s1395_s3 + $0x20] sm:$0xff]  ;;  %v439_v45 = vld [vmem:[%s1395_s3 + $0x28] sm:$0xff] }
  0x17   : > { %v440_v46 = vld [vmem:[%s1395_s3 + $0x30] sm:$0xff]  ;;  %v441_v47 = vld [vmem:[%s1395_s3 + $0x38] sm:$0xff]  ;;  %v628_v48 = vld [vmem:[%s1397_s5] sm:$0xff] }
  0x18   : > { %s854_s22 = sshll.u32 %s293_s21, 2  ;;  %452 = vperm.xlu0 %1039, %v442_v9   ;;  %v630_v22 = vld [vmem:[%s1397_s5 + $0x10] sm:$0xff]  ;;  %s291_s21 = scalar_lea.vmem [#allocation2], %s853_s20 }
  0x19   : > { %s298_s12 = scalar_lea.vmem %s1392_s0, %s854_s22  ;;  %457 = vperm.xlu1 %1040, %v443_v10   ;;  %s773_s23 = sshll.u32 %s291_s21, 4  ;;  %s1339_s23 = int_to_ptr.vmem [resolvable:$true] %s773_s23 }
  0x1a   : > { %v299_v6 = vld [vmem:[%s298_s12] sm:$0xf]  ;;  %s877_s22 = sshll.u32 %s1111_s27, 9  ;;  %s1346_s27 = scalar_lea.sflag [#allocation3], %s289_s19 }
  0x1b   : > { %907 = vmatprep.subr.msk.mxu0 %vm341_vm1, %v299_v6  ;;  %s1344_s10 = scalar_lea.hbm %s1399_s7, %s877_s22  ;;  %s1041_s12 = scalar_lea.vmem %s1339_s23, 512 }
  0x1c   : > { %908 = vmatpush3.msk.msra.mxu0 %vm341_vm1, %v299_v6  ;;  %462 = vperm.xlu0 %1039, %v444_v12   ;;  %p1042_p12 = scmp.ne.s32.totalorder %s1339_s23, %s1041_s12  ;;  %p1048_p1 = scmp.lt.s32.totalorder %s1339_s23, %s1046_s16 }
  0x1d   : > { %910 = vmatmul.mubr.msk.f32.vlgmr.msra.gmra.mrb[0].mxu0 %vm328_vm0, %v301_v7  ;;  %467 = vperm.xlu1 %1040, %v445_v13   ;;  %p1049_p2 = scmp.lt.s32.totalorder %s1047_s17, %s1041_s12 }
  0x1e   : > { %912 = vmatprep.mubr.msk.f32.mxu0 %vm328_vm0, %v302_v8  ;;  %p1043_p13 = pnand %p1042_p12, %p1205_p4 }
  0x1f   : > { %p1050_p3 = por %p1049_p2, %p1048_p1 }
  0x20   : > { %472 = vperm.xlu0 %1039, %v446_v14   ;;  %p1044_p0 = pneg %p1043_p13 }
  0x21   : > { %913 = vmatmul.mubr.msk.f32.gmra.mrb[2].mxu0 %vm328_vm0, %v303_v11  ;;  %477 = vperm.xlu1 %1040, %v447_v15  }
  0x22   : > { %951 = vmatprep.mubr.msk.f32.mxu0 %vm656_vm3, %v628_v48  ;;  %p1051_p5 = pnand %p1050_p3, %p1044_p0 }
  0x24   : > { %482 = vperm.xlu0 %1039, %v448_v16  }
  0x25   : > { %487 = vperm.xlu1 %1040, %v449_v17  }
  0x28   : > { %638 = vperm.xlu0 %1039, %v632_v18  }
  0x29   : > { %643 = vperm.xlu1 %1040, %v633_v19  }
  0x2c   : > { %648 = vperm.xlu0 %1039, %v634_v20  }
  0x2d   : > { %653 = vperm.xlu1 %1040, %v635_v21   ;;  %v629_v21 = vld [vmem:[%s1397_s5 + $0x8] sm:$0xff] }
  0x8f   : > { %v311_v23 = vpop.permute.xlu0 %310 }
  0x90   : > { %v321_v24 = vpop.permute.xlu1 %320 }
  0x93   : > { %v316_v25 = vpop.permute.xlu0 %315 }
  0x94   : > { %v326_v31 = vpop.permute.xlu1 %325 }
  0x97   : > { %v453_v50 = vpop.permute.xlu0 %452 }
  0x98   : > { %v458_v49 = vpop.permute.xlu1 %457 }
  0x9b   : > { %v463_v53 = vpop.permute.xlu0 %462 }
  0x9c   : > { %v468_v51 = vpop.permute.xlu1 %467 }
  0x9f   : > { %v473_v1 = vpop.permute.xlu0 %472 }
  0xa0   : > { %v478_v62 = vpop.permute.xlu1 %477 }
  0xa3   : > { %v483_v13 = vpop.permute.xlu0 %482 }
  0xa4   : > { %v488_v10 = vpop.permute.xlu1 %487 }
  0xf0   : > { %v911_v26 = vpop.f32.mrb[0].mxu0 }
  0xf1   : > { %v417_v27 = vadd.f32 %v911_v26, %v316_v25  ;;  %v411_v28 = vpop.f32.mrb[1].mxu0  ;;  %v639_v25 = vpop.permute.xlu0 %638 }
  0xf2   : > { %v412_v29 = vadd.f32 %v411_v28, %v311_v23  ;;  %v631_v23 = vld [vmem:[%s1397_s5 + $0x18] sm:$0xff] }
  0xf3   : > { %v431_v30 = vmax.f32 %v417_v27, 0.0 }
  0xf4   : > { %v430_v32 = vmax.f32 %v412_v29, 0.0  ;;  %v914_v33 = vpop.f32.mrb[2].mxu0 }
  0xf5   : > { %v427_v34 = vadd.f32 %v914_v33, %v326_v31  ;;  %v421_v35 = vpop.f32.mrb[3].mxu0 }
  0xf6   : > { %v422_v36 = vadd.f32 %v421_v35, %v321_v24  ;;  %v957_v37 = vpack.c.bf16 %v431_v30, %v430_v32  ;;  %v644_v24 = vpop.permute.xlu1 %643  ;;  %v649_v32 = vpop.permute.xlu0 %648 }
  0xf7   : > { %v433_v38 = vmax.f32 %v427_v34, 0.0 }
  0xf8   : > { %v432_v39 = vmax.f32 %v422_v36, 0.0  ;;  %958 = vmatprep.subr.bf16.mxu1 %v957_v37 }
  0xf9   : > { %960 = vmatpush3.bf16.msra.mxu1 %v957_v37 }
  0xfa   : > { %v961_v40 = vpack.c.bf16 %v433_v38, %v432_v39  ;;  %v654_v30 = vpop.permute.xlu1 %653 }
  0xfc   : > { %962 = vmatprep.subr.bf16.mxu1 %v961_v40 }
  0xfd   : > { %964 = vmatpush3.bf16.msra.mxu1 %v961_v40 }
 0x100   : > { %924 = vmatmul.mubr.msk.f32.vlgmr.msra.gmra.mrb[0].mxu1 %vm490_vm2, %v435_v41 }
 0x101   : > { %926 = vmatprep.mubr.msk.f32.mxu1 %vm490_vm2, %v436_v42 }
 0x104   : > { %927 = vmatmul.mubr.msk.f32.gmra.mrb[2].mxu1 %vm490_vm2, %v437_v43 }
 0x105   : > { %929 = vmatprep.mubr.msk.f32.mxu1 %vm490_vm2, %v438_v44 }
 0x108   : > { %930 = vmatmul.mubr.msk.f32.gmra.mrb[4].mxu1 %vm490_vm2, %v439_v45 }
 0x109   : > { %932 = vmatprep.mubr.msk.f32.mxu1 %vm490_vm2, %v440_v46 }
 0x10c   : > { %933 = vmatmul.mubr.msk.f32.gmra.mrb[6].mxu1 %vm490_vm2, %v441_v47 }
 0x1d3   : > { %v925_v52 = vpop.f32.mrb[0].mxu1 }
 0x1d4   : > { %v587_v54 = vadd.f32 %v925_v52, %v458_v49  ;;  %v581_v55 = vpop.f32.mrb[1].mxu1 }
 0x1d5   : > { %v582_v56 = vadd.f32 %v581_v55, %v453_v50 }
 0x1d6   : > { %v621_v57 = vmax.f32 %v587_v54, 0.0 }
 0x1d7   : > { %v620_v58 = vmax.f32 %v582_v56, 0.0  ;;  %v928_v59 = vpop.f32.mrb[2].mxu1 }
 0x1d8   : > { %v597_v60 = vadd.f32 %v928_v59, %v468_v51  ;;  %v591_v61 = vpop.f32.mrb[3].mxu1 }
 0x1d9   : > { %v965_v63 = vpack.c.bf16 %v621_v57, %v620_v58  ;;  %v592_v0 = vadd.f32 %v591_v61, %v463_v53 }
 0x1da   : > { %v623_v2 = vmax.f32 %v597_v60, 0.0 }
 0x1db   : > { %v622_v3 = vmax.f32 %v592_v0, 0.0  ;;  %v931_v4 = vpop.f32.mrb[4].mxu1  ;;  %966 = vmatprep.subr.bf16.mxu0 %v965_v63 }
 0x1dc   : > { %v607_v5 = vadd.f32 %v931_v4, %v478_v62  ;;  %v601_v6 = vpop.f32.mrb[5].mxu1  ;;  %968 = vmatpush3.bf16.msra.mxu0 %v965_v63 }
 0x1dd   : > { %v969_v7 = vpack.c.bf16 %v623_v2, %v622_v3  ;;  %v602_v8 = vadd.f32 %v601_v6, %v473_v1 }
 0x1de   : > { %v625_v9 = vmax.f32 %v607_v5, 0.0 }
 0x1df   : > { %v624_v11 = vmax.f32 %v602_v8, 0.0  ;;  %v934_v12 = vpop.f32.mrb[6].mxu1  ;;  %970 = vmatprep.subr.bf16.mxu0 %v969_v7 }
 0x1e0   : > { %v617_v14 = vadd.f32 %v934_v12, %v488_v10  ;;  %v611_v15 = vpop.f32.mrb[7].mxu1  ;;  %972 = vmatpush3.bf16.msra.mxu0 %v969_v7 }
 0x1e1   : > { %v973_v16 = vpack.c.bf16 %v625_v9, %v624_v11  ;;  %v612_v17 = vadd.f32 %v611_v15, %v483_v13 }
 0x1e2   : > { %v627_v18 = vmax.f32 %v617_v14, 0.0 }
 0x1e3   : > { %v626_v19 = vmax.f32 %v612_v17, 0.0  ;;  %974 = vmatprep.subr.bf16.mxu0 %v973_v16 }
 0x1e4   : > { %976 = vmatpush3.bf16.msra.mxu0 %v973_v16 }
 0x1e5   : > { %v977_v20 = vpack.c.bf16 %v627_v18, %v626_v19 }
 0x1e7   : > { %978 = vmatprep.subr.bf16.mxu0 %v977_v20 }
 0x1e8   : > { %980 = vmatpush3.bf16.msra.mxu0 %v977_v20 }
 0x1eb   : > { %952 = vmatmul.mubr.msk.f32.vlgmr.msra.gmra.mrb[4].mxu0 %vm656_vm3, %v629_v21 }
 0x1ec   : > { %954 = vmatprep.mubr.msk.f32.mxu0 %vm656_vm3, %v630_v22 }
 0x1ef   : > { %955 = vmatmul.mubr.msk.f32.gmra.mrb[6].mxu0 %vm656_vm3, %v631_v23 }
 0x2be   : > { %v953_v26 = vpop.f32.mrb[4].mxu0 }
 0x2bf   : > { %v741_v27 = vadd.f32 %v953_v26, %v644_v24  ;;  %v735_v28 = vpop.f32.mrb[5].mxu0 }
 0x2c0   : > { %v736_v29 = vadd.f32 %v735_v28, %v639_v25 }
 0x2c1   : > { %755 = vst [vmem:[%s291_s21 + $0x8] sm:$0xff] %v741_v27 }
 0x2c2   : > { %754 = vst [vmem:[%s291_s21] sm:$0xff] %v736_v29  ;;  %v956_v31 = vpop.f32.mrb[6].mxu0 }
 0x2c3   : > { %v751_v33 = vadd.f32 %v956_v31, %v654_v30  ;;  %v745_v34 = vpop.f32.mrb[7].mxu0 }
 0x2c4   : > { %v746_v35 = vadd.f32 %v745_v34, %v649_v32 }
 0x2c5   : > { %757 = vst [vmem:[%s291_s21 + $0x18] sm:$0xff] %v751_v33 }
 0x2c6   : > { %756 = vst [vmem:[%s291_s21 + $0x10] sm:$0xff] %v746_v35 }
 0x2c7   : > { %1054 = shalt.err (!%p1051_p5)
}
 0x2c8   : > { %s1055_s18 = scalar_lea.hbm %s1344_s10, 512  ;;  %s1059_s21 = scalar_lea.hbm %s1399_s7, 1024 }
 0x2c9   : > { %p1056_p6 = scmp.ne.s32.totalorder %s1344_s10, %s1055_s18  ;;  %p1060_p10 = scmp.lt.u32.totalorder %s1344_s10, %s1399_s7 }
 0x2ca   : > { %p1061_p11 = scmp.lt.u32.totalorder %s1059_s21, %s1055_s18  ;;  %p1063_p13 = scmp.lt.u32.totalorder %s1055_s18, %s1344_s10 }
 0x2cb   : > { %p1057_p7 = pnand %p1056_p6, %p1205_p4 }
 0x2cc   : > { %p1062_p12 = por %p1061_p11, %p1060_p10 }
 0x2cd   : > { %p1058_p9 = pneg %p1057_p7 }
 0x2ce   : > { %p1064_p0 = por %p1063_p13, %p1062_p12 }
 0x2d0   : > { %p1065_p1 = pnand %p1064_p0, %p1058_p9 }
 0x2d2   : > { %1068 = shalt.err (!%p1065_p1)
}
 0x2d3   : > { %s1123_s8 = smov 128   ;;  %s1124_s12 = smov 8  }
 0x2d4   : > { %981 = dma.vmem_to_hbm [thread:$0]  (%p1205_p4), %s1339_s23, 512, %s1344_s10, %s1346_s27, %s1123_s8, %s1123_s8, %s1124_s12  }
 0x2d5 PF: > { %p987_p2 = scmp.ge.s32.totalorder %s1119_s29, 2  ;;  %s788_s15 = sand.u32 1, %s1099_s24  }
 0x2d6   : > { %s789_s16 = scalar_lea.sflag [#allocation3], %s788_s15 }
 0x2d7   : > { %p984_p3 = pnand %p987_p2, %p1212_p8 }
 0x2d9   : > { %1094 = dma.done.wait (!%p984_p3), %s789_s16, 512  }
 0x2da   : > { %1096 = vsyncadd (!%p984_p3), %s789_s16, 4294966784  ;;  %s20_s29 = sadd.s32 1, %s1119_s29   ;;  %s1402_s24 = smov %s1103_s25 }
 0x2db   : > { %p17_p5 = scmp.ge.s32.totalorder %s20_s29, 4   ;;  %s1403_s25 = smov %s1107_s26 }
 0x2dc   : > { %s1404_s26 = smov %s1218_s14  ;;  %s1405_s27 = smov %s1115_s28 }
 0x2dd   : > { %s1406_s28 = smov %s1408_s9  ;;  %19 = sbr.rel (!%p17_p5) target bundleno = 4 (0x4), region = 83 }
 0x2e4   :  { %794 = vsyncpa [#allocation3], 1 }
 0x2e5   :  { %796 = vsyncpa [#allocation3 + $0x1], 1 }

</bundles_post_ra>
